<compile_context>
chip_gen: v7x
topology: tpu7x:2x2x1
jax: 0.10.0
libtpu: 0.0.40
codegen_flags: <defaults>
</compile_context>

<pallas_src>
import functools

import jax
import jax.numpy as jnp
from jax.experimental import pallas as pl
from jax.experimental.pallas import tpu as pltpu

NEURONS = 64
_LANE = 128          # lane width; batch tiles must be a multiple of this
_MAX_TILE = 4096     # rows per grid step: (64, 4096) f32 activation = 1 MiB


# ----------------------------- Pallas kernel ---------------------------------
def _mlp_kernel(xt_ref, w1_ref, b1_ref, w2_ref, b2_ref, w3_ref, b3_ref,
                w4_ref, b4_ref, o_ref, *, use_bf16):
    # Feature-major layout: activations are (features, TILE); batch on lanes.
    xt = xt_ref[...]                                     # (2, TILE): row0=x, row1=t
    w1 = w1_ref[...]                                     # (64, 2)

    # Layer 1: K=2 contraction -> two VPU rank-1 multiply-adds (no MXU pass).
    h = jnp.tanh(w1[:, 0:1] * xt[0:1, :] + w1[:, 1:2] * xt[1:2, :] + b1_ref[...])

    def dense(w_ref, b_ref, act):
        w = w_ref[...]
        if use_bf16:                       # single bf16 MXU pass, f32 accumulate
            w = w.astype(jnp.bfloat16)
            act = act.astype(jnp.bfloat16)
        return jnp.dot(w, act, preferred_element_type=jnp.float32) + b_ref[...]

    # Layers 2 & 3: (64,64) @ (64,TILE) on the MXU, lane-dense result.
    h = jnp.tanh(dense(w2_ref, b2_ref, h))
    h = jnp.tanh(dense(w3_ref, b3_ref, h))

    # Output layer: (1,64) @ (64,TILE) -> (1,TILE); lane-dense unmasked store.
    o_ref[...] = dense(w4_ref, b4_ref, h)


def _round_up(n, m):
    return ((n + m - 1) // m) * m


def _cdiv(a, b):
    return -(-a // b)


def _choose_tiling(n):
    """Balanced lane-tiling of the batch axis (all Python ints, static under jit)."""
    n_lane = _round_up(n, _LANE)
    num_tiles = _cdiv(n_lane, _MAX_TILE)
    # v7x has 2 TensorCores: guarantee >=2 (and an even number of) grid steps
    # whenever there is enough work to split.  v5e/v6e (1 TC) are unaffected.
    if n_lane >= 2 * _LANE:
        if num_tiles < 2:
            num_tiles = 2
        elif num_tiles % 2:
            num_tiles += 1
    tile = _round_up(_cdiv(n_lane, num_tiles), _LANE)
    num_tiles = _cdiv(n_lane, tile)        # drop any all-padding tail tile
    return tile, num_tiles * tile


@functools.partial(jax.jit, static_argnames=("use_bf16",))
def net_forward(x, t, params, use_bf16=False):
    """x, t: (N, 1) float32.  Returns (N, 1) float32."""
    (w1, b1), (w2, b2), (w3, b3), (w4, b4) = params
    n = x.shape[0]

    tile, n_pad = _choose_tiling(n)

    # Stack x and t into one feature-major (2, N_pad) slab: single input DMA
    # stream, half the sublane-padding waste of two (1, TILE) blocks.
    # (The pad is a small one-time copy; the kernel itself is compute-bound.)
    xt = jnp.concatenate([x.reshape(1, n), t.reshape(1, n)], axis=0)
    xt = jnp.pad(xt, ((0, 0), (0, n_pad - n)))

    batch_in_spec = pl.BlockSpec((2, tile), lambda i: (0, i))
    batch_out_spec = pl.BlockSpec((1, tile), lambda i: (0, i))

    def resident_spec(shape):
        # Whole array, same block every step -> stays resident in VMEM.
        return pl.BlockSpec(shape, lambda i: (0, 0))

    kernel = functools.partial(_mlp_kernel, use_bf16=use_bf16)

    out = pl.pallas_call(
        kernel,
        out_shape=jax.ShapeDtypeStruct((1, n_pad), jnp.float32),
        grid=(n_pad // tile,),
        in_specs=[
            batch_in_spec,                # xt (2, N_pad)
            resident_spec(w1.shape),      # (64, 2)
            resident_spec(b1.shape),      # (64, 1)
            resident_spec(w2.shape),      # (64, 64)
            resident_spec(b2.shape),      # (64, 1)
            resident_spec(w3.shape),      # (64, 64)
            resident_spec(b3.shape),      # (64, 1)
            resident_spec(w4.shape),      # (1, 64)
            resident_spec(b4.shape),      # (1, 1)
        ],
        out_specs=batch_out_spec,
        compiler_params=pltpu.CompilerParams(
            dimension_semantics=("parallel",),     # shards across TCs on v7x
            vmem_limit_bytes=32 * 1024 * 1024,     # headroom for TILE=4096 on v5e
        ),
    )(xt, w1, b1, w2, b2, w3, b3, w4, b4)

    return out[:, :n].reshape(n, 1)


# --------------------------- parameter construction ---------------------------
def _xavier_uniform(key, out_f, in_f):
    # torch.nn.init.xavier_uniform_: U(-a, a), a = sqrt(6 / (fan_in + fan_out))
    a = jnp.sqrt(6.0 / (in_f + out_f))
    return jax.random.uniform(key, (out_f, in_f), jnp.float32, -a, a)


def _default_bias(key, out_f, in_f):
    # torch.nn.Linear default bias init: U(-1/sqrt(fan_in), 1/sqrt(fan_in))
    bound = 1.0 / jnp.sqrt(in_f)
    return jax.random.uniform(key, (out_f,), jnp.float32, -bound, bound)


def _spectral_normalize(w, key, n_power_iterations=1, eps=1e-12):
    # Mirror torch.nn.utils.spectral_norm forward: one power-iteration step
    # (deterministic u init here), then W / sigma with sigma = u^T W v.
    # TODO(synk): PyTorch keeps a persistent `u` buffer updated each forward;
    # here it is computed once at parameter-build time (model-fidelity caveat).
    out_f, in_f = w.shape
    u = jax.random.normal(key, (out_f,), jnp.float32)
    u = u / jnp.maximum(jnp.linalg.norm(u), eps)
    v = None
    for _ in range(n_power_iterations):
        v = w.T @ u
        v = v / jnp.maximum(jnp.linalg.norm(v), eps)
        u = w @ v
        u = u / jnp.maximum(jnp.linalg.norm(u), eps)
    sigma = u @ (w @ v)
    return w / sigma


def make_params(key):
    ks = jax.random.split(key, 9)
    w1 = _xavier_uniform(ks[0], NEURONS, 2)
    w1 = _spectral_normalize(w1, ks[8])          # spectral_norm on layer 1
    b1 = _default_bias(ks[1], NEURONS, 2)
    w2 = _xavier_uniform(ks[2], NEURONS, NEURONS)
    b2 = _default_bias(ks[3], NEURONS, NEURONS)
    w3 = _xavier_uniform(ks[4], NEURONS, NEURONS)
    b3 = _default_bias(ks[5], NEURONS, NEURONS)
    w4 = _xavier_uniform(ks[6], 1, NEURONS)
    b4 = _default_bias(ks[7], 1, NEURONS)

    # Weights stay in PyTorch (out, in) layout; biases become (out, 1) columns
    # to match the feature-major kernel layout.
    def pack(w, b):
        return (w.astype(jnp.float32), b.reshape(-1, 1).astype(jnp.float32))

    return (pack(w1, b1), pack(w2, b2), pack(w3, b3), pack(w4, b4))


# ------------------------------- reference ------------------------------------
def net_forward_ref(x, t, params):
    (w1, b1), (w2, b2), (w3, b3), (w4, b4) = params
    h = jnp.concatenate([x, t], axis=1)
    h = jnp.tanh(h @ w1.T + b1.T)
    h = jnp.tanh(h @ w2.T + b2.T)
    h = jnp.tanh(h @ w3.T + b3.T)
    return h @ w4.T + b4.T


# --------------------------------- main ---------------------------------------
if __name__ == "__main__":
    key = jax.random.PRNGKey(0)
    k_p, k_x, k_t = jax.random.split(key, 3)

    params = make_params(k_p)

    # Batches exercising: single-tile path, lane padding + forced 2-step grid,
    # and a balanced multi-tile grid with no wasted tail tile.
    for N in (8, 200, 2500):
        kx, kt = jax.random.split(jax.random.fold_in(k_x, N))
        x = jax.random.uniform(kx, (N, 1), jnp.float32)   # spatial coord
        t = jax.random.uniform(kt, (N, 1), jnp.float32)   # time coord

        ref = net_forward_ref(x, t, params)

        out = jax.block_until_ready(net_forward(x, t, params))
        assert out.shape == (N, 1), out.shape
        assert jnp.allclose(out, ref, atol=1e-5, rtol=1e-5), (N, out, ref)

        # Optional reduced-precision MXU path (single bf16 pass per matmul).
        out_bf16 = jax.block_until_ready(net_forward(x, t, params, use_bf16=True))
        assert out_bf16.shape == (N, 1), out_bf16.shape
        assert jnp.allclose(out_bf16, ref, atol=2e-2, rtol=2e-2), (N,)

    print("KERNEL_OK")
</pallas_src>

<mosaic_0001>
module attributes {stable_mosaic.version = 11 : i64} {
  func.func @_mlp_kernel(%arg0: i32, %arg1: memref<2x128xf32, #tpu.memory_space<vmem>>, %arg2: memref<64x2xf32, #tpu.memory_space<vmem>>, %arg3: memref<64x1xf32, #tpu.memory_space<vmem>>, %arg4: memref<64x64xf32, #tpu.memory_space<vmem>>, %arg5: memref<64x1xf32, #tpu.memory_space<vmem>>, %arg6: memref<64x64xf32, #tpu.memory_space<vmem>>, %arg7: memref<64x1xf32, #tpu.memory_space<vmem>>, %arg8: memref<1x64xf32, #tpu.memory_space<vmem>>, %arg9: memref<1x1xf32, #tpu.memory_space<vmem>>, %arg10: memref<1x128xf32, #tpu.memory_space<vmem>>) attributes {dimension_semantics = [#tpu.dimension_semantics<parallel>], iteration_bounds = array<i64: 1>, scalar_prefetch = 0 : i64, scratch_operands = 0 : i64, tpu.core_type = #tpu.core_type<tc>, window_params = [{transform_indices = @transform_0, window_bounds = array<i64: 2, 128>}, {pipeline_mode = #tpu.pipeline_mode<synchronous>, transform_indices = @transform_1, window_bounds = array<i64: 64, 2>}, {pipeline_mode = #tpu.pipeline_mode<synchronous>, transform_indices = @transform_2, window_bounds = array<i64: 64, 1>}, {pipeline_mode = #tpu.pipeline_mode<synchronous>, transform_indices = @transform_3, window_bounds = array<i64: 64, 64>}, {pipeline_mode = #tpu.pipeline_mode<synchronous>, transform_indices = @transform_4, window_bounds = array<i64: 64, 1>}, {pipeline_mode = #tpu.pipeline_mode<synchronous>, transform_indices = @transform_5, window_bounds = array<i64: 64, 64>}, {pipeline_mode = #tpu.pipeline_mode<synchronous>, transform_indices = @transform_6, window_bounds = array<i64: 64, 1>}, {pipeline_mode = #tpu.pipeline_mode<synchronous>, transform_indices = @transform_7, window_bounds = array<i64: 1, 64>}, {pipeline_mode = #tpu.pipeline_mode<synchronous>, transform_indices = @transform_8, window_bounds = array<i64: 1, 1>}, {transform_indices = @transform_9, window_bounds = array<i64: 1, 128>}]} {
    %c0 = arith.constant 0 : index
    %c0_0 = arith.constant 0 : index
    %0 = vector.load %arg1[%c0, %c0_0] : memref<2x128xf32, #tpu.memory_space<vmem>>, vector<2x128xf32>
    %c0_1 = arith.constant 0 : index
    %c0_2 = arith.constant 0 : index
    %1 = vector.load %arg2[%c0_1, %c0_2] : memref<64x2xf32, #tpu.memory_space<vmem>>, vector<64x2xf32>
    %2 = vector.extract_strided_slice %1 {offsets = [0, 0], sizes = [64, 1], strides = [1, 1]} : vector<64x2xf32> to vector<64x1xf32>
    %3 = vector.extract_strided_slice %0 {offsets = [0, 0], sizes = [1, 128], strides = [1, 1]} : vector<2x128xf32> to vector<1x128xf32>
    %4 = vector.broadcast %2 : vector<64x1xf32> to vector<64x128xf32>
    %5 = vector.broadcast %3 : vector<1x128xf32> to vector<64x128xf32>
    %6 = arith.mulf %4, %5 : vector<64x128xf32>
    %7 = vector.extract_strided_slice %1 {offsets = [0, 1], sizes = [64, 1], strides = [1, 1]} : vector<64x2xf32> to vector<64x1xf32>
    %8 = vector.extract_strided_slice %0 {offsets = [1, 0], sizes = [1, 128], strides = [1, 1]} : vector<2x128xf32> to vector<1x128xf32>
    %9 = vector.broadcast %7 : vector<64x1xf32> to vector<64x128xf32>
    %10 = vector.broadcast %8 : vector<1x128xf32> to vector<64x128xf32>
    %11 = arith.mulf %9, %10 : vector<64x128xf32>
    %12 = arith.addf %6, %11 : vector<64x128xf32>
    %c0_3 = arith.constant 0 : index
    %c0_4 = arith.constant 0 : index
    %13 = vector.load %arg3[%c0_3, %c0_4] : memref<64x1xf32, #tpu.memory_space<vmem>>, vector<64x1xf32>
    %14 = vector.broadcast %13 : vector<64x1xf32> to vector<64x128xf32>
    %15 = arith.addf %12, %14 : vector<64x128xf32>
    %16 = math.tanh %15 : vector<64x128xf32>
    %c0_5 = arith.constant 0 : index
    %c0_6 = arith.constant 0 : index
    %17 = vector.load %arg4[%c0_5, %c0_6] : memref<64x64xf32, #tpu.memory_space<vmem>>, vector<64x64xf32>
    %cst = arith.constant dense<0.000000e+00> : vector<64x128xf32>
    %18 = tpu.matmul %17, %16, %cst {dimension_numbers = #tpu.dot_dimension_numbers<[1], [0], [0], [1], [0, 0, 1, 1], [], []>} : vector<64x64xf32>, vector<64x128xf32>, vector<64x128xf32> -> vector<64x128xf32>
    %c0_7 = arith.constant 0 : index
    %c0_8 = arith.constant 0 : index
    %19 = vector.load %arg5[%c0_7, %c0_8] : memref<64x1xf32, #tpu.memory_space<vmem>>, vector<64x1xf32>
    %20 = vector.broadcast %19 : vector<64x1xf32> to vector<64x128xf32>
    %21 = arith.addf %18, %20 : vector<64x128xf32>
    %22 = math.tanh %21 : vector<64x128xf32>
    %c0_9 = arith.constant 0 : index
    %c0_10 = arith.constant 0 : index
    %23 = vector.load %arg6[%c0_9, %c0_10] : memref<64x64xf32, #tpu.memory_space<vmem>>, vector<64x64xf32>
    %cst_11 = arith.constant dense<0.000000e+00> : vector<64x128xf32>
    %24 = tpu.matmul %23, %22, %cst_11 {dimension_numbers = #tpu.dot_dimension_numbers<[1], [0], [0], [1], [0, 0, 1, 1], [], []>} : vector<64x64xf32>, vector<64x128xf32>, vector<64x128xf32> -> vector<64x128xf32>
    %c0_12 = arith.constant 0 : index
    %c0_13 = arith.constant 0 : index
    %25 = vector.load %arg7[%c0_12, %c0_13] : memref<64x1xf32, #tpu.memory_space<vmem>>, vector<64x1xf32>
    %26 = vector.broadcast %25 : vector<64x1xf32> to vector<64x128xf32>
    %27 = arith.addf %24, %26 : vector<64x128xf32>
    %28 = math.tanh %27 : vector<64x128xf32>
    %c0_14 = arith.constant 0 : index
    %c0_15 = arith.constant 0 : index
    %29 = vector.load %arg8[%c0_14, %c0_15] : memref<1x64xf32, #tpu.memory_space<vmem>>, vector<1x64xf32>
    %cst_16 = arith.constant dense<0.000000e+00> : vector<1x128xf32>
    %30 = tpu.matmul %29, %28, %cst_16 {dimension_numbers = #tpu.dot_dimension_numbers<[1], [0], [0], [1], [0, 0, 1, 1], [], []>} : vector<1x64xf32>, vector<64x128xf32>, vector<1x128xf32> -> vector<1x128xf32>
    %c0_17 = arith.constant 0 : index
    %c0_18 = arith.constant 0 : index
    %31 = vector.load %arg9[%c0_17, %c0_18] : memref<1x1xf32, #tpu.memory_space<vmem>>, vector<1x1xf32>
    %32 = vector.broadcast %31 : vector<1x1xf32> to vector<1x128xf32>
    %33 = arith.addf %30, %32 : vector<1x128xf32>
    %c0_19 = arith.constant 0 : index
    %c0_20 = arith.constant 0 : index
    %34 = vector.load %arg10[%c0_19, %c0_20] : memref<1x128xf32, #tpu.memory_space<vmem>>, vector<1x128xf32>
    tpu.vector_store %arg10[%c0_19, %c0_20], %33 {strides = array<i32>} : memref<1x128xf32, #tpu.memory_space<vmem>>, vector<1x128xf32>,
    return
  }
  func.func @transform_0(%arg0: i32) -> (i32, i32) {
    %c0_i32 = arith.constant 0 : i32
    %c0_i32_0 = arith.constant 0 : i32
    return %c0_i32, %arg0 : i32, i32
  }
  func.func @transform_1(%arg0: i32) -> (i32, i32) {
    %c0_i32 = arith.constant 0 : i32
    %c0_i32_0 = arith.constant 0 : i32
    %c0_i32_1 = arith.constant 0 : i32
    return %c0_i32, %c0_i32_0 : i32, i32
  }
  func.func @transform_2(%arg0: i32) -> (i32, i32) {
    %c0_i32 = arith.constant 0 : i32
    %c0_i32_0 = arith.constant 0 : i32
    %c0_i32_1 = arith.constant 0 : i32
    return %c0_i32, %c0_i32_0 : i32, i32
  }
  func.func @transform_3(%arg0: i32) -> (i32, i32) {
    %c0_i32 = arith.constant 0 : i32
    %c0_i32_0 = arith.constant 0 : i32
    %c0_i32_1 = arith.constant 0 : i32
    return %c0_i32, %c0_i32_0 : i32, i32
  }
  func.func @transform_4(%arg0: i32) -> (i32, i32) {
    %c0_i32 = arith.constant 0 : i32
    %c0_i32_0 = arith.constant 0 : i32
    %c0_i32_1 = arith.constant 0 : i32
    return %c0_i32, %c0_i32_0 : i32, i32
  }
  func.func @transform_5(%arg0: i32) -> (i32, i32) {
    %c0_i32 = arith.constant 0 : i32
    %c0_i32_0 = arith.constant 0 : i32
    %c0_i32_1 = arith.constant 0 : i32
    return %c0_i32, %c0_i32_0 : i32, i32
  }
  func.func @transform_6(%arg0: i32) -> (i32, i32) {
    %c0_i32 = arith.constant 0 : i32
    %c0_i32_0 = arith.constant 0 : i32
    %c0_i32_1 = arith.constant 0 : i32
    return %c0_i32, %c0_i32_0 : i32, i32
  }
  func.func @transform_7(%arg0: i32) -> (i32, i32) {
    %c0_i32 = arith.constant 0 : i32
    %c0_i32_0 = arith.constant 0 : i32
    %c0_i32_1 = arith.constant 0 : i32
    return %c0_i32, %c0_i32_0 : i32, i32
  }
  func.func @transform_8(%arg0: i32) -> (i32, i32) {
    %c0_i32 = arith.constant 0 : i32
    %c0_i32_0 = arith.constant 0 : i32
    %c0_i32_1 = arith.constant 0 : i32
    return %c0_i32, %c0_i32_0 : i32, i32
  }
  func.func @transform_9(%arg0: i32) -> (i32, i32) {
    %c0_i32 = arith.constant 0 : i32
    %c0_i32_0 = arith.constant 0 : i32
    return %c0_i32, %arg0 : i32, i32
  }
}

</mosaic_0001>

<bundles_post_ra>
// kernel: net_forward.1
= control target key start
LH: loop header
LB: loop body
LE: loop exit
PB: predicated region body
PF: predicated region fallthrough
CT: control target
= control target key end

     0   :  { %v927_v0 = vmov 1   ;;  %v928_v8 = vmov 0   ;;  %vm267_vm0 = vcmask 523264   ;;  %v83_v39 = vlaneseq  ;;  %s1166_s1 = inlined_call_operand.vmem [shape: f32[64,2], index: 1, kind: input, shape index: {}]   ;;  %s1167_s8 = inlined_call_operand.<no memory space> [shape: f32[1,1], index: 8, kind: input, shape index: {}]   ;;  %s1168_s2 = inlined_call_operand.vmem [shape: f32[64,1], index: 2, kind: input, shape index: {}]   ;;  %s1169_s4 = inlined_call_operand.vmem [shape: f32[64,1], index: 4, kind: input, shape index: {}]   ;;  %s1170_s6 = inlined_call_operand.vmem [shape: f32[64,1], index: 6, kind: input, shape index: {}]   ;;  %s1171_s3 = inlined_call_operand.vmem [shape: f32[64,64], index: 3, kind: input, shape index: {}]   ;;  %s1172_s0 = inlined_call_operand.vmem [shape: f32[2,128], index: 0, kind: input, shape index: {}]   ;;  %s1173_s5 = inlined_call_operand.vmem [shape: f32[64,64], index: 5, kind: input, shape index: {}]   ;;  %s1174_s7 = inlined_call_operand.vmem [shape: f32[1,64], index: 7, kind: input, shape index: {}]   ;;  %s1175_s9 = inlined_call_operand.vmem [shape: f32[1,128], index: 9, kind: output, shape index: {}]  }
   0x1   :  { %871 = vset.pattern.permute.xlu0 %v927_v0  ;;  %869 = vset.pattern.permute.xlu1 %v927_v0  ;;  %v37_v1 = vld [vmem:[%s1166_s1 + $0x10] sm:$0xff]  ;;  %v35_v2 = vld [vmem:[%s1166_s1] sm:$0xff]  ;;  %v14_v3 = vstv %s1167_s8  ;;  %v36_v5 = vld [vmem:[%s1166_s1 + $0x8] sm:$0xff]  ;;  %vm930_vm1 = vmmov 0  }
   0x2   :  { %104 = vperm.xlu0 %871, %v37_v1   ;;  %96 = vperm.xlu1 %869, %v35_v2   ;;  %15 = vst [vmem:[#allocation2] sm:$0x1] %v14_v3  ;;  %v39_v4 = vld [vmem:[%s1166_s1 + $0x20] sm:$0xff]  ;;  %v41_v6 = vld [vmem:[%s1166_s1 + $0x30] sm:$0xff]  ;;  %v38_v7 = vld [vmem:[%s1166_s1 + $0x18] sm:$0xff]  ;;  %v1085_v42 = vshrl.u32 %v83_v39, 7 }
   0x3   :  { %v147_v9 = vld [vmem:[%s1168_s2] sm:$0xff]  ;;  %v148_v10 = vld [vmem:[%s1168_s2 + $0x8] sm:$0xff]  ;;  %v150_v12 = vld [vmem:[%s1168_s2 + $0x18] sm:$0xff] }
   0x4   :  { %v40_v11 = vld [vmem:[%s1166_s1 + $0x28] sm:$0xff]  ;;  %v219_v14 = vld [vmem:[%s1169_s4] sm:$0xff]  ;;  %v149_v15 = vld [vmem:[%s1168_s2 + $0x10] sm:$0xff]  ;;  %v129_v45 = vsub.s32 1, %v1085_v42  ;;  %v85_v46 = vsub.s32 0, %v1085_v42 }
   0x5   :  { %v152_v13 = vld [vmem:[%s1168_s2 + $0x28] sm:$0xff]  ;;  %v221_v16 = vld [vmem:[%s1169_s4 + $0x10] sm:$0xff]  ;;  %v223_v17 = vld [vmem:[%s1169_s4 + $0x20] sm:$0xff] }
   0x6   :  { %112 = vperm.xlu0 %871, %v39_v4   ;;  %100 = vperm.xlu1 %869, %v36_v5   ;;  %v42_v18 = vld [vmem:[%s1166_s1 + $0x38] sm:$0xff]  ;;  %v225_v19 = vld [vmem:[%s1169_s4 + $0x30] sm:$0xff]  ;;  %v413_v20 = vld [vmem:[%s1170_s6] sm:$0xff] }
   0x7   :  { %v151_v21 = vld [vmem:[%s1168_s2 + $0x20] sm:$0xff]  ;;  %v415_v22 = vld [vmem:[%s1170_s6 + $0x10] sm:$0xff]  ;;  %v154_v25 = vld [vmem:[%s1168_s2 + $0x38] sm:$0xff] }
   0x8   :  { %v153_v23 = vld [vmem:[%s1168_s2 + $0x30] sm:$0xff]  ;;  %v417_v24 = vld [vmem:[%s1170_s6 + $0x20] sm:$0xff]  ;;  %v220_v27 = vld [vmem:[%s1169_s4 + $0x8] sm:$0xff] }
   0x9   :  { %v419_v26 = vld [vmem:[%s1170_s6 + $0x30] sm:$0xff]  ;;  %v599_v28 = vld [vmem:[#allocation2] sm:$0x1]  ;;  %v222_v29 = vld [vmem:[%s1169_s4 + $0x18] sm:$0xff] }
   0xa   :  { %120 = vperm.xlu0 %871, %v41_v6   ;;  %870 = vset.pattern.permute.xlu1 %v928_v8  ;;  %v224_v30 = vld [vmem:[%s1169_s4 + $0x28] sm:$0xff]  ;;  %v226_v31 = vld [vmem:[%s1169_s4 + $0x38] sm:$0xff]  ;;  %v211_v33 = vld [vmem:[%s1171_s3] sm:$0xff] }
   0xb   :  { %60 = vperm.xlu1 %870, %v38_v7   ;;  %v414_v32 = vld [vmem:[%s1170_s6 + $0x8] sm:$0xff]  ;;  %761 = vmatprep.mubr.msk.f32.mxu0 %vm267_vm0, %v211_v33  ;;  %v416_v34 = vld [vmem:[%s1170_s6 + $0x18] sm:$0xff]  ;;  %v34_v47 = vld [vmem:[%s1172_s0] sm:$0x3] }
   0xc   :  { %v418_v35 = vld [vmem:[%s1170_s6 + $0x28] sm:$0xff]  ;;  %v420_v36 = vld [vmem:[%s1170_s6 + $0x38] sm:$0xff]  ;;  %v130_v50 = vrot.slane %v34_v47, %v129_v45  ;;  %v86_v51 = vrot.slane %v34_v47, %v85_v46 }
   0xe   :  { %876 = vset.pattern.permute.xlu0 %v928_v8 }
   0xf   :  { %45 = vperm.xlu0 %876, %v35_v2   ;;  %872 = vset.pattern.permute.xlu1 %v927_v0 }
  0x10   :  { %108 = vperm.xlu1 %872, %v38_v7  }
  0x13   :  { %50 = vperm.xlu0 %876, %v36_v5  }
  0x14   :  { %873 = vset.pattern.permute.xlu1 %v928_v8 }
  0x15   :  { %157 = vperm.xlu1 %873, %v147_v9  }
  0x17   :  { %55 = vperm.xlu0 %876, %v37_v1  }
  0x19   :  { %65 = vperm.xlu1 %873, %v39_v4  }
  0x1b   :  { %162 = vperm.xlu0 %876, %v148_v10  }
  0x1d   :  { %70 = vperm.xlu1 %873, %v40_v11  }
  0x1f   :  { %172 = vperm.xlu0 %876, %v150_v12  }
  0x21   :  { %874 = vset.pattern.permute.xlu1 %v927_v0 }
  0x22   :  { %116 = vperm.xlu1 %874, %v40_v11  }
  0x23   :  { %182 = vperm.xlu0 %876, %v152_v13  }
  0x26   :  { %875 = vset.pattern.permute.xlu1 %v928_v8 }
  0x27   :  { %229 = vperm.xlu0 %876, %v219_v14   ;;  %167 = vperm.xlu1 %875, %v149_v15  }
  0x2b   :  { %239 = vperm.xlu0 %876, %v221_v16   ;;  %75 = vperm.xlu1 %875, %v41_v6  }
  0x2f   :  { %249 = vperm.xlu0 %876, %v223_v17   ;;  %80 = vperm.xlu1 %875, %v42_v18  }
  0x33   :  { %259 = vperm.xlu0 %876, %v225_v19   ;;  %877 = vset.pattern.permute.xlu1 %v927_v0 }
  0x34   :  { %124 = vperm.xlu1 %877, %v42_v18  }
  0x37   :  { %423 = vperm.xlu0 %876, %v413_v20  }
  0x38   :  { %878 = vset.pattern.permute.xlu1 %v928_v8 }
  0x39   :  { %177 = vperm.xlu1 %878, %v151_v21  }
  0x3b   :  { %433 = vperm.xlu0 %876, %v415_v22  }
  0x3d   :  { %187 = vperm.xlu1 %878, %v153_v23  }
  0x3f   :  { %443 = vperm.xlu0 %876, %v417_v24  }
  0x41   :  { %192 = vperm.xlu1 %878, %v154_v25  }
  0x43   :  { %453 = vperm.xlu0 %876, %v419_v26  }
  0x45   :  { %234 = vperm.xlu1 %878, %v220_v27  }
  0x47   :  { %602 = vperm.xlu0 %876, %v599_v28  }
  0x49   :  { %244 = vperm.xlu1 %878, %v222_v29  }
  0x4d   :  { %254 = vperm.xlu1 %878, %v224_v30  }
  0x51   :  { %264 = vperm.xlu1 %878, %v226_v31  }
  0x55   :  { %428 = vperm.xlu1 %878, %v414_v32  }
  0x59   :  { %438 = vperm.xlu1 %878, %v416_v34  }
  0x5d   :  { %448 = vperm.xlu1 %878, %v418_v35  }
  0x61   :  { %458 = vperm.xlu1 %878, %v420_v36  }
  0x81   :  { %v97_v37 = vpop.permute.xlu1 %96  ;;  %v105_v38 = vpop.permute.xlu0 %104 }
  0x82   :  { %v131_v54 = vmul.f32 %v130_v50, %v97_v37  ;;  %v133_v4 = vmul.f32 %v130_v50, %v105_v38 }
  0x85   :  { %v101_v40 = vpop.permute.xlu1 %100  ;;  %v113_v41 = vpop.permute.xlu0 %112 }
  0x86   :  { %v132_v59 = vmul.f32 %v130_v50, %v101_v40  ;;  %v135_v23 = vmul.f32 %v130_v50, %v113_v41 }
  0x89   :  { %v1087_v43 = vpop.permute.xlu0 %120 }
  0x8a   :  { %v61_v44 = vpop.permute.xlu1 %60  ;;  %v137_v33 = vmul.f32 %v130_v50, %v1087_v43 }
  0x8b   :  { %v90_v3 = vmul.f32 %v86_v51, %v61_v44 }
  0x8e   :  { %v46_v48 = vpop.permute.xlu0 %45 }
  0x8f   :  { %v109_v49 = vpop.permute.xlu1 %108  ;;  %v87_v52 = vmul.f32 %v86_v51, %v46_v48 }
  0x90   :  { %v134_v2 = vmul.f32 %v130_v50, %v109_v49 }
  0x91   :  { %v139_v57 = vadd.f32 %v131_v54, %v87_v52  ;;  %v214_v52 = vld [vmem:[%s1171_s3 + $0x18] sm:$0xff]  ;;  %v216_v54 = vld [vmem:[%s1171_s3 + $0x28] sm:$0xff] }
  0x92   :  { %v51_v53 = vpop.permute.xlu0 %50  ;;  %v142_v8 = vadd.f32 %v134_v2, %v90_v3 }
  0x93   :  { %v88_v56 = vmul.f32 %v86_v51, %v51_v53  ;;  %v215_v53 = vld [vmem:[%s1171_s3 + $0x20] sm:$0xff] }
  0x94   :  { %v158_v55 = vpop.permute.xlu1 %157 }
  0x95   :  { %v195_v60 = vadd.f32 %v158_v55, %v139_v57  ;;  %v140_v62 = vadd.f32 %v132_v59, %v88_v56  ;;  %v217_v55 = vld [vmem:[%s1171_s3 + $0x30] sm:$0xff]  ;;  %v218_v56 = vld [vmem:[%s1171_s3 + $0x38] sm:$0xff]  ;;  %v405_v57 = vld [vmem:[%s1173_s5] sm:$0xff] }
  0x96   :  { %v56_v58 = vpop.permute.xlu0 %55  ;;  %789 = vmatprep.mubr.msk.f32.mxu1 %vm267_vm0, %v405_v57 }
  0x97   :  { %879 = vtanh.f32 %v195_v60  ;;  %v89_v5 = vmul.f32 %v86_v51, %v56_v58 }
  0x98   :  { %v66_v61 = vpop.permute.xlu1 %65 }
  0x99   :  { %v141_v10 = vadd.f32 %v133_v4, %v89_v5  ;;  %v91_v24 = vmul.f32 %v86_v51, %v66_v61 }
  0x9a   :  { %v163_v63 = vpop.permute.xlu0 %162 }
  0x9b   :  { %v196_v0 = vadd.f32 %v163_v63, %v140_v62  ;;  %v143_v29 = vadd.f32 %v135_v23, %v91_v24 }
  0x9c   :  { %v71_v1 = vpop.permute.xlu1 %70 }
  0x9d   :  { %881 = vtanh.f32 %v196_v0  ;;  %v92_v19 = vmul.f32 %v86_v51, %v71_v1 }
  0x9e   :  { %v173_v6 = vpop.permute.xlu0 %172 }
  0x9f   :  { %v198_v9 = vadd.f32 %v173_v6, %v142_v8 }
  0xa1   :  { %v117_v7 = vpop.permute.xlu1 %116  ;;  %v880_v11 = vpop.eup %879  ;;  %883 = vtanh.f32 %v198_v9 }
  0xa2   :  { %v136_v17 = vmul.f32 %v130_v50, %v117_v7  ;;  %v183_v27 = vpop.permute.xlu0 %182 }
  0xa4   :  { %v144_v21 = vadd.f32 %v136_v17, %v92_v19 }
  0xa6   :  { %v168_v12 = vpop.permute.xlu1 %167  ;;  %v200_v28 = vadd.f32 %v183_v27, %v144_v21  ;;  %v230_v59 = vpop.permute.xlu0 %229 }
  0xa7   :  { %v882_v13 = vpop.eup %881  ;;  %v197_v14 = vadd.f32 %v168_v12, %v141_v10 }
  0xa8   :  { %v820_v15 = vpack.c.bf16 %v882_v13, %v880_v11 }
  0xa9   :  { %885 = vtanh.f32 %v197_v14 }
  0xaa   :  { %v76_v16 = vpop.permute.xlu1 %75  ;;  %821 = vmatprep.subr.bf16.mxu0 %v820_v15  ;;  %887 = vtanh.f32 %v200_v28  ;;  %v240_v62 = vpop.permute.xlu0 %239 }
  0xab   :  { %823 = vmatpush3.bf16.msra.mxu0 %v820_v15  ;;  %v884_v20 = vpop.eup %883  ;;  %v93_v30 = vmul.f32 %v86_v51, %v76_v16 }
  0xad   :  { %v145_v36 = vadd.f32 %v137_v33, %v93_v30  ;;  %v406_v30 = vld [vmem:[%s1173_s5 + $0x8] sm:$0xff]  ;;  %v409_v33 = vld [vmem:[%s1173_s5 + $0x20] sm:$0xff] }
  0xae   :  { %v81_v18 = vpop.permute.xlu1 %80  ;;  %v250_v7 = vpop.permute.xlu0 %249 }
  0xaf   :  { %v94_v37 = vmul.f32 %v86_v51, %v81_v18  ;;  %v213_v51 = vld [vmem:[%s1171_s3 + $0x10] sm:$0xff] }
  0xb2   :  { %v260_v15 = vpop.permute.xlu0 %259 }
  0xb3   :  { %v886_v22 = vpop.eup %885  ;;  %v125_v25 = vpop.permute.xlu1 %124 }
  0xb4   :  { %v824_v26 = vpack.c.bf16 %v884_v20, %v886_v22  ;;  %v138_v34 = vmul.f32 %v130_v50, %v125_v25  ;;  %v888_v44 = vpop.eup %887  ;;  %v212_v50 = vld [vmem:[%s1171_s3 + $0x8] sm:$0xff] }
  0xb6   :  { %825 = vmatprep.subr.bf16.mxu0 %v824_v26  ;;  %v146_v39 = vadd.f32 %v138_v34, %v94_v37  ;;  %v410_v34 = vld [vmem:[%s1173_s5 + $0x28] sm:$0xff]  ;;  %v929_v37 = vmov 0.0|0.0  }
  0xb7   :  { %827 = vmatpush3.bf16.msra.mxu0 %v824_v26 }
  0xb8   :  { %v178_v31 = vpop.permute.xlu1 %177 }
  0xb9   :  { %v199_v32 = vadd.f32 %v178_v31, %v143_v29  ;;  %v407_v31 = vld [vmem:[%s1173_s5 + $0x10] sm:$0xff] }
  0xbb   :  { %889 = vtanh.f32 %v199_v32  ;;  %v408_v32 = vld [vmem:[%s1173_s5 + $0x18] sm:$0xff] }
  0xbc   :  { %v188_v35 = vpop.permute.xlu1 %187 }
  0xbd   :  { %v201_v38 = vadd.f32 %v188_v35, %v145_v36  ;;  %v411_v35 = vld [vmem:[%s1173_s5 + $0x30] sm:$0xff]  ;;  %v412_v36 = vld [vmem:[%s1173_s5 + $0x38] sm:$0xff] }
  0xbf   :  { %891 = vtanh.f32 %v201_v38  ;;  %v931_v38 = vmov 0.0  }
  0xc0   :  { %v193_v40 = vpop.permute.xlu1 %192 }
  0xc1   :  { %v202_v41 = vadd.f32 %v193_v40, %v146_v39  ;;  %v424_v40 = vpop.permute.xlu0 %423 }
  0xc3   :  { %893 = vtanh.f32 %v202_v41 }
  0xc4   :  { %v235_v58 = vpop.permute.xlu1 %234 }
  0xc5   :  { %v890_v45 = vpop.eup %889 }
  0xc6   :  { %v828_v47 = vpack.c.bf16 %v888_v44, %v890_v45  ;;  %v434_v45 = vpop.permute.xlu0 %433 }
  0xc8   :  { %829 = vmatprep.subr.bf16.mxu0 %v828_v47  ;;  %v245_v60 = vpop.permute.xlu1 %244 }
  0xc9   :  { %831 = vmatpush3.bf16.msra.mxu0 %v828_v47  ;;  %v892_v48 = vpop.eup %891 }
  0xcc   :  { %v255_v5 = vpop.permute.xlu1 %254 }
  0xcd   :  { %v894_v49 = vpop.eup %893 }
  0xce   :  { %v832_v43 = vpack.c.bf16 %v894_v49, %v892_v48 }
  0xd0   :  { %833 = vmatprep.subr.bf16.mxu0 %v832_v43  ;;  %v265_v12 = vpop.permute.xlu1 %264 }
  0xd1   :  { %835 = vmatpush3.bf16.msra.mxu0 %v832_v43 }
  0xd2   :  { %852 = vmatprep.subr.bf16.mxu0 %v929_v37 }
  0xd4   :  { %762 = vmatmul.mubr.msk.f32.vlgmr.msra.gmra.mrb[0].mxu0 %vm267_vm0, %v212_v50  ;;  %v429_v39 = vpop.permute.xlu1 %428 }
  0xd5   :  { %764 = vmatprep.mubr.msk.f32.mxu0 %vm267_vm0, %v213_v51 }
  0xd8   :  { %765 = vmatmul.mubr.msk.f32.gmra.mrb[2].mxu0 %vm267_vm0, %v214_v52  ;;  %v439_v41 = vpop.permute.xlu1 %438 }
  0xd9   :  { %767 = vmatprep.mubr.msk.f32.mxu0 %vm267_vm0, %v215_v53 }
  0xdc   :  { %768 = vmatmul.mubr.msk.f32.gmra.mrb[4].mxu0 %vm267_vm0, %v216_v54  ;;  %v449_v52 = vpop.permute.xlu1 %448  ;;  %v444_v54 = vpop.permute.xlu0 %443 }
  0xdd   :  { %770 = vmatprep.mubr.msk.f32.mxu0 %vm267_vm0, %v217_v55 }
  0xe0   :  { %771 = vmatmul.mubr.msk.f32.gmra.mrb[6].mxu0 %vm267_vm0, %v218_v56 }
  0xe1   :  { %817 = vmatprep.mubr.msk.f32.mxu0 %vm930_vm1, %v931_v38 }
 0x1a7   :  { %v763_v61 = vpop.f32.mrb[0].mxu0 }
 0x1a8   :  { %v364_v63 = vadd.f32 %v763_v61, %v235_v58  ;;  %v358_v0 = vpop.f32.mrb[1].mxu0 }
 0x1a9   :  { %v359_v1 = vadd.f32 %v358_v0, %v230_v59  ;;  %v459_v59 = vpop.permute.xlu1 %458 }
 0x1aa   :  { %895 = vtanh.f32 %v364_v63 }
 0x1ab   :  { %897 = vtanh.f32 %v359_v1  ;;  %v766_v2 = vpop.f32.mrb[2].mxu0 }
 0x1ac   :  { %v374_v3 = vadd.f32 %v766_v2, %v245_v60  ;;  %v368_v4 = vpop.f32.mrb[3].mxu0 }
 0x1ad   :  { %v369_v6 = vadd.f32 %v368_v4, %v240_v62  ;;  %v454_v62 = vpop.permute.xlu0 %453 }
 0x1ae   :  { %899 = vtanh.f32 %v374_v3 }
 0x1af   :  { %901 = vtanh.f32 %v369_v6  ;;  %v769_v8 = vpop.f32.mrb[4].mxu0 }
 0x1b0   :  { %v384_v9 = vadd.f32 %v769_v8, %v255_v5  ;;  %v378_v10 = vpop.f32.mrb[5].mxu0 }
 0x1b1   :  { %v379_v11 = vadd.f32 %v378_v10, %v250_v7 }
 0x1b2   :  { %903 = vtanh.f32 %v384_v9 }
 0x1b3   :  { %905 = vtanh.f32 %v379_v11  ;;  %v772_v13 = vpop.f32.mrb[6].mxu0 }
 0x1b4   :  { %v896_v14 = vpop.eup %895  ;;  %v394_v16 = vadd.f32 %v772_v13, %v265_v12  ;;  %v388_v17 = vpop.f32.mrb[7].mxu0  ;;  %v598_v13 = vld [vmem:[%s1174_s7] sm:$0x1] }
 0x1b5   :  { %v898_v18 = vpop.eup %897  ;;  %v389_v19 = vadd.f32 %v388_v17, %v260_v15 }
 0x1b6   :  { %907 = vtanh.f32 %v394_v16  ;;  %v836_v20 = vpack.c.bf16 %v896_v14, %v898_v18  ;;  %v603_v14 = vpop.permute.xlu0 %602 }
 0x1b7   :  { %909 = vtanh.f32 %v389_v19  ;;  %v608_v15 = vrot.slane %v603_v14, %v85_v46 }
 0x1b8   :  { %v900_v21 = vpop.eup %899  ;;  %837 = vmatprep.subr.bf16.mxu1 %v836_v20 }
 0x1b9   :  { %v902_v22 = vpop.eup %901  ;;  %839 = vmatpush3.bf16.msra.mxu1 %v836_v20 }
 0x1ba   :  { %v840_v23 = vpack.c.bf16 %v900_v21, %v902_v22 }
 0x1bc   :  { %v904_v24 = vpop.eup %903  ;;  %841 = vmatprep.subr.bf16.mxu1 %v840_v23 }
 0x1bd   :  { %v906_v25 = vpop.eup %905  ;;  %843 = vmatpush3.bf16.msra.mxu1 %v840_v23 }
 0x1be   :  { %v844_v26 = vpack.c.bf16 %v904_v24, %v906_v25 }
 0x1c0   :  { %v908_v27 = vpop.eup %907  ;;  %845 = vmatprep.subr.bf16.mxu1 %v844_v26 }
 0x1c1   :  { %v910_v28 = vpop.eup %909  ;;  %847 = vmatpush3.bf16.msra.mxu1 %v844_v26 }
 0x1c2   :  { %v848_v29 = vpack.c.bf16 %v908_v27, %v910_v28 }
 0x1c4   :  { %849 = vmatprep.subr.bf16.mxu1 %v848_v29 }
 0x1c5   :  { %851 = vmatpush3.bf16.msra.mxu1 %v848_v29 }
 0x1c8   :  { %790 = vmatmul.mubr.msk.f32.vlgmr.msra.gmra.mrb[0].mxu1 %vm267_vm0, %v406_v30 }
 0x1c9   :  { %792 = vmatprep.mubr.msk.f32.mxu1 %vm267_vm0, %v407_v31 }
 0x1cc   :  { %793 = vmatmul.mubr.msk.f32.gmra.mrb[2].mxu1 %vm267_vm0, %v408_v32 }
 0x1cd   :  { %795 = vmatprep.mubr.msk.f32.mxu1 %vm267_vm0, %v409_v33 }
 0x1d0   :  { %796 = vmatmul.mubr.msk.f32.gmra.mrb[4].mxu1 %vm267_vm0, %v410_v34 }
 0x1d1   :  { %798 = vmatprep.mubr.msk.f32.mxu1 %vm267_vm0, %v411_v35 }
 0x1d4   :  { %799 = vmatmul.mubr.msk.f32.gmra.mrb[6].mxu1 %vm267_vm0, %v412_v36 }
 0x29b   :  { %v791_v44 = vpop.f32.mrb[0].mxu1 }
 0x29c   :  { %v557_v47 = vadd.f32 %v791_v44, %v429_v39  ;;  %v551_v48 = vpop.f32.mrb[1].mxu1 }
 0x29d   :  { %v552_v49 = vadd.f32 %v551_v48, %v424_v40 }
 0x29e   :  { %911 = vtanh.f32 %v557_v47 }
 0x29f   :  { %913 = vtanh.f32 %v552_v49  ;;  %v794_v43 = vpop.f32.mrb[2].mxu1 }
 0x2a0   :  { %v567_v50 = vadd.f32 %v794_v43, %v439_v41  ;;  %v561_v51 = vpop.f32.mrb[3].mxu1 }
 0x2a1   :  { %v562_v53 = vadd.f32 %v561_v51, %v434_v45 }
 0x2a2   :  { %915 = vtanh.f32 %v567_v50 }
 0x2a3   :  { %917 = vtanh.f32 %v562_v53  ;;  %v797_v55 = vpop.f32.mrb[4].mxu1 }
 0x2a4   :  { %v577_v56 = vadd.f32 %v797_v55, %v449_v52  ;;  %v571_v57 = vpop.f32.mrb[5].mxu1 }
 0x2a5   :  { %v572_v58 = vadd.f32 %v571_v57, %v444_v54 }
 0x2a6   :  { %919 = vtanh.f32 %v577_v56 }
 0x2a7   :  { %921 = vtanh.f32 %v572_v58  ;;  %v800_v60 = vpop.f32.mrb[6].mxu1 }
 0x2a8   :  { %v912_v61 = vpop.eup %911  ;;  %v587_v63 = vadd.f32 %v800_v60, %v459_v59  ;;  %v581_v0 = vpop.f32.mrb[7].mxu1 }
 0x2a9   :  { %v914_v1 = vpop.eup %913  ;;  %v582_v2 = vadd.f32 %v581_v0, %v454_v62 }
 0x2aa   :  { %923 = vtanh.f32 %v587_v63  ;;  %v853_v3 = vpack.c.bf16 %v912_v61, %v914_v1 }
 0x2ab   :  { %925 = vtanh.f32 %v582_v2 }
 0x2ac   :  { %v916_v4 = vpop.eup %915  ;;  %854 = vmatpush3.bf16.msra.mxu0 %v853_v3 }
 0x2ad   :  { %v918_v5 = vpop.eup %917  ;;  %855 = vmatprep.subr.bf16.mxu0 %v929_v37 }
 0x2ae   :  { %v856_v6 = vpack.c.bf16 %v916_v4, %v918_v5 }
 0x2b0   :  { %v920_v7 = vpop.eup %919  ;;  %857 = vmatpush3.bf16.msra.mxu0 %v856_v6 }
 0x2b1   :  { %v922_v8 = vpop.eup %921  ;;  %858 = vmatprep.subr.bf16.mxu0 %v929_v37 }
 0x2b2   :  { %v859_v9 = vpack.c.bf16 %v920_v7, %v922_v8 }
 0x2b4   :  { %v924_v10 = vpop.eup %923  ;;  %860 = vmatpush3.bf16.msra.mxu0 %v859_v9 }
 0x2b5   :  { %v926_v11 = vpop.eup %925  ;;  %861 = vmatprep.subr.bf16.mxu0 %v929_v37 }
 0x2b6   :  { %v862_v12 = vpack.c.bf16 %v924_v10, %v926_v11 }
 0x2b8   :  { %863 = vmatpush3.bf16.msra.mxu0 %v862_v12 }
 0x2bb   :  { %818 = vmatmul.mubr.msk.f32.vlgmr.msra.gmra.mrb[8].mxu0 %vm267_vm0, %v598_v13 }
 0x38e   :  { %v678_v16 = vpop.f32.mrb[8].mxu0 }
 0x38f   :  { %v679_v17 = vadd.f32 %v678_v16, %v608_v15  ;;  %v819_v18 = vpop.f32.mrb[9].mxu0 }
 0x391   :  { %682 = vst [vmem:[%s1175_s9] sm:$0x1] %v679_v17 }

</bundles_post_ra>
